<compile_context>
chip_gen: v7x
topology: tpu7x:2x2x1
jax: 0.10.0
libtpu: 0.0.40
codegen_flags: <defaults>
</compile_context>

<pallas_src>
import jax
import jax.numpy as jnp
from jax.experimental import pallas as pl
from jax.experimental.pallas import tpu as pltpu


LANE = 128


def mlp_kernel(xcat_ref, *refs):
    """refs = (w0, b0, w1, b1, ..., w_out, b_out, out_ref).

    Weights may be bf16 (dot operands are cast to the weight dtype); biases,
    accumulation and the ReLU epilogue are f32.
    """
    out_ref = refs[-1]
    wb = refs[:-1]
    n_layers = len(wb) // 2

    h = xcat_ref[...].astype(jnp.float32)
    for i in range(n_layers):
        w = wb[2 * i][...]
        b = wb[2 * i + 1][...]
        y = jnp.dot(h.astype(w.dtype), w, preferred_element_type=jnp.float32) + b
        h = jnp.maximum(y, 0.0) if i < n_layers - 1 else y

    out_ref[...] = h.astype(out_ref.dtype)


def init_mlp_params(key, input_dim, output_dim, num_hidden_layers, hidden_layer_dim,
                    dtype=jnp.float32):
    """PyTorch default Linear init: U(-1/sqrt(fan_in), 1/sqrt(fan_in)).

    Weights stored as (in_features, out_features); biases as (1, out_features).
    """
    params = []
    dims = [input_dim] + [hidden_layer_dim] * (num_hidden_layers + 1) + [output_dim]
    for fan_in, fan_out in zip(dims[:-1], dims[1:]):
        key, kw, kb = jax.random.split(key, 3)
        bound = 1.0 / (fan_in ** 0.5)
        w = jax.random.uniform(kw, (fan_in, fan_out), dtype, -bound, bound)
        b = jax.random.uniform(kb, (1, fan_out), dtype, -bound, bound)
        params.append((w, b))
    return params


def _round_up(n, m):
    return ((n + m - 1) // m) * m


def _pad_params_for_tpu(params, dot_dtype):
    """Zero-pad feature dims to 128 lanes; cast weights to the dot dtype.

    Exactness: padded W columns, padded bias entries, and the corresponding
    padded rows of the next layer's W are all zero, and ReLU(0)=0, so padded
    lanes carry exact zeros through the whole network.  The first layer's
    input dim is left unpadded (matches the narrow xcat tile).
    """
    padded = []
    for idx, (w, b) in enumerate(params):
        d_in, d_out = w.shape
        d_in_p = d_in if idx == 0 else _round_up(d_in, LANE)
        d_out_p = _round_up(d_out, LANE)
        w_p = jnp.zeros((d_in_p, d_out_p), jnp.float32).at[:d_in, :d_out].set(
            w.astype(jnp.float32))
        b_p = jnp.zeros((1, d_out_p), jnp.float32).at[:, :d_out].set(
            b.reshape(1, -1).astype(jnp.float32))
        padded.append((w_p.astype(dot_dtype), b_p))
    return padded


def mlp_forward(x, t, params, *, tile_b=1024, dot_dtype=jnp.bfloat16):
    """Full MLP forward in one pallas_call, gridded over the batch dimension."""
    batch = x.shape[0]
    xcat = jnp.concatenate([x, t], axis=1)          # concat in the wrapper
    input_dim = xcat.shape[1]
    output_dim = params[-1][0].shape[1]

    pparams = _pad_params_for_tpu(params, dot_dtype)
    out_dim_p = pparams[-1][0].shape[1]             # lane-dense output (>=128)

    # Batch tile: multiple of 8 sublanes, capped by tile_b; guarantee >= 2 grid
    # steps when the batch allows it so v7x's two TensorCores both get work.
    tb = _round_up(min(tile_b, _round_up(batch, 8)), 8)
    if _round_up(batch, tb) // tb < 2 and tb > 8:
        tb = _round_up((tb + 1) // 2, 8)
    padded_b = _round_up(batch, tb)
    if padded_b != batch:
        xcat = jnp.pad(xcat, ((0, padded_b - batch), (0, 0)))

    # Inputs: pipelined activation tile + resident (weight, bias) pairs.
    inputs = [xcat]
    in_specs = [pl.BlockSpec((tb, input_dim), lambda i: (i, 0))]
    for (w, b) in pparams:
        inputs.extend([w, b])
        in_specs.append(pl.BlockSpec(w.shape, lambda i: (0, 0)))
        in_specs.append(pl.BlockSpec(b.shape, lambda i: (0, 0)))

    flops = 2 * padded_b * sum(w.shape[0] * w.shape[1] for (w, _) in pparams)
    bytes_accessed = (
        xcat.dtype.itemsize * padded_b * input_dim
        + 4 * padded_b * out_dim_p
        + sum(w.size * w.dtype.itemsize + b.size * b.dtype.itemsize
              for (w, b) in pparams))
    cost = pl.CostEstimate(flops=flops, transcendentals=0,
                           bytes_accessed=bytes_accessed)

    out = pl.pallas_call(
        mlp_kernel,
        out_shape=jax.ShapeDtypeStruct((padded_b, out_dim_p), x.dtype),
        grid=(pl.cdiv(padded_b, tb),),
        in_specs=in_specs,
        out_specs=pl.BlockSpec((tb, out_dim_p), lambda i: (i, 0)),
        compiler_params=pltpu.CompilerParams(
            dimension_semantics=("parallel",)),      # shards batch tiles on v7x
        cost_estimate=cost,
    )(*inputs)

    return out[:batch, :output_dim]


def mlp_reference(x, t, params):
    """Plain-JAX f32 reference for validation."""
    h = jnp.concatenate([x, t], axis=1)
    for (w, b) in params[:-1]:
        h = jnp.maximum(h @ w + b, 0.0)
    w_out, b_out = params[-1]
    return h @ w_out + b_out


if __name__ == "__main__":
    # Shapes consistent with the diffusion MLP: x is [batch, 2], t is [batch, 1]
    # => input_dim = 3; module defaults: hidden_layer_dim=64, num_hidden_layers=4,
    # output_dim = 2.
    key = jax.random.PRNGKey(0)
    kx, kt, kp, kx2, kt2 = jax.random.split(key, 5)

    x_dim, t_dim = 2, 1
    input_dim = x_dim + t_dim
    output_dim = 2
    num_hidden_layers = 4
    hidden_layer_dim = 64

    params = init_mlp_params(kp, input_dim, output_dim,
                             num_hidden_layers, hidden_layer_dim)

    # --- Small batch: exact f32 path (validates the lane-padding is exact). ---
    batch = 8
    x = jax.random.normal(kx, (batch, x_dim), jnp.float32)
    t = jax.random.uniform(kt, (batch, t_dim), jnp.float32)
    ref = mlp_reference(x, t, params)

    out_f32 = jax.block_until_ready(
        mlp_forward(x, t, params, dot_dtype=jnp.float32))
    assert out_f32.shape == (batch, output_dim)
    assert jnp.allclose(out_f32, ref, atol=1e-5, rtol=1e-5), \
        "f32 path mismatch vs reference (batch=8)"

    # --- Same batch, default bf16 dot operands (looser tolerance). ---
    out_bf16 = jax.block_until_ready(mlp_forward(x, t, params))
    assert jnp.allclose(out_bf16, ref, atol=5e-2, rtol=5e-2), \
        "bf16 path mismatch vs reference (batch=8)"

    # --- Larger batch: exercises the batch grid, padding and parallel axis. ---
    batch2 = 2048
    x2 = jax.random.normal(kx2, (batch2, x_dim), jnp.float32)
    t2 = jax.random.uniform(kt2, (batch2, t_dim), jnp.float32)
    ref2 = mlp_reference(x2, t2, params)

    out2 = jax.block_until_ready(mlp_forward(x2, t2, params, tile_b=1024))
    assert out2.shape == (batch2, output_dim)
    assert jnp.allclose(out2, ref2, atol=5e-2, rtol=5e-2), \
        "bf16 path mismatch vs reference (batch=2048)"

    out2_f32 = jax.block_until_ready(
        mlp_forward(x2, t2, params, tile_b=1024, dot_dtype=jnp.float32))
    assert jnp.allclose(out2_f32, ref2, atol=1e-5, rtol=1e-5), \
        "f32 path mismatch vs reference (batch=2048)"

    print("KERNEL_OK")
</pallas_src>

<mosaic_0001>
module attributes {stable_mosaic.version = 11 : i64} {
  func.func @mlp_kernel(%arg0: i32, %arg1: memref<8x3xf32, #tpu.memory_space<vmem>>, %arg2: memref<3x128xf32, #tpu.memory_space<vmem>>, %arg3: memref<1x128xf32, #tpu.memory_space<vmem>>, %arg4: memref<128x128xf32, #tpu.memory_space<vmem>>, %arg5: memref<1x128xf32, #tpu.memory_space<vmem>>, %arg6: memref<128x128xf32, #tpu.memory_space<vmem>>, %arg7: memref<1x128xf32, #tpu.memory_space<vmem>>, %arg8: memref<128x128xf32, #tpu.memory_space<vmem>>, %arg9: memref<1x128xf32, #tpu.memory_space<vmem>>, %arg10: memref<128x128xf32, #tpu.memory_space<vmem>>, %arg11: memref<1x128xf32, #tpu.memory_space<vmem>>, %arg12: memref<128x128xf32, #tpu.memory_space<vmem>>, %arg13: memref<1x128xf32, #tpu.memory_space<vmem>>, %arg14: memref<8x128xf32, #tpu.memory_space<vmem>>) attributes {dimension_semantics = [#tpu.dimension_semantics<parallel>], iteration_bounds = array<i64: 1>, scalar_prefetch = 0 : i64, scratch_operands = 0 : i64, tpu.core_type = #tpu.core_type<tc>, window_params = [{transform_indices = @transform_0, window_bounds = array<i64: 8, 3>}, {pipeline_mode = #tpu.pipeline_mode<synchronous>, transform_indices = @transform_1, window_bounds = array<i64: 3, 128>}, {pipeline_mode = #tpu.pipeline_mode<synchronous>, transform_indices = @transform_2, window_bounds = array<i64: 1, 128>}, {pipeline_mode = #tpu.pipeline_mode<synchronous>, transform_indices = @transform_3, window_bounds = array<i64: 128, 128>}, {pipeline_mode = #tpu.pipeline_mode<synchronous>, transform_indices = @transform_4, window_bounds = array<i64: 1, 128>}, {pipeline_mode = #tpu.pipeline_mode<synchronous>, transform_indices = @transform_5, window_bounds = array<i64: 128, 128>}, {pipeline_mode = #tpu.pipeline_mode<synchronous>, transform_indices = @transform_6, window_bounds = array<i64: 1, 128>}, {pipeline_mode = #tpu.pipeline_mode<synchronous>, transform_indices = @transform_7, window_bounds = array<i64: 128, 128>}, {pipeline_mode = #tpu.pipeline_mode<synchronous>, transform_indices = @transform_8, window_bounds = array<i64: 1, 128>}, {pipeline_mode = #tpu.pipeline_mode<synchronous>, transform_indices = @transform_9, window_bounds = array<i64: 128, 128>}, {pipeline_mode = #tpu.pipeline_mode<synchronous>, transform_indices = @transform_10, window_bounds = array<i64: 1, 128>}, {pipeline_mode = #tpu.pipeline_mode<synchronous>, transform_indices = @transform_11, window_bounds = array<i64: 128, 128>}, {pipeline_mode = #tpu.pipeline_mode<synchronous>, transform_indices = @transform_12, window_bounds = array<i64: 1, 128>}, {transform_indices = @transform_13, window_bounds = array<i64: 8, 128>}]} {
    %c0 = arith.constant 0 : index
    %c0_0 = arith.constant 0 : index
    %0 = vector.load %arg1[%c0, %c0_0] : memref<8x3xf32, #tpu.memory_space<vmem>>, vector<8x3xf32>
    %c0_1 = arith.constant 0 : index
    %c0_2 = arith.constant 0 : index
    %1 = vector.load %arg2[%c0_1, %c0_2] : memref<3x128xf32, #tpu.memory_space<vmem>>, vector<3x128xf32>
    %c0_3 = arith.constant 0 : index
    %c0_4 = arith.constant 0 : index
    %2 = vector.load %arg3[%c0_3, %c0_4] : memref<1x128xf32, #tpu.memory_space<vmem>>, vector<1x128xf32>
    %cst = arith.constant dense<0.000000e+00> : vector<8x128xf32>
    %3 = tpu.matmul %0, %1, %cst {dimension_numbers = #tpu.dot_dimension_numbers<[1], [0], [0], [1], [0, 0, 1, 1], [], []>} : vector<8x3xf32>, vector<3x128xf32>, vector<8x128xf32> -> vector<8x128xf32>
    %4 = vector.broadcast %2 : vector<1x128xf32> to vector<8x128xf32>
    %5 = arith.addf %3, %4 : vector<8x128xf32>
    %cst_5 = arith.constant 0.000000e+00 : f32
    %6 = vector.broadcast %cst_5 : f32 to vector<8x128xf32>
    %7 = arith.maximumf %5, %6 : vector<8x128xf32>
    %c0_6 = arith.constant 0 : index
    %c0_7 = arith.constant 0 : index
    %8 = vector.load %arg4[%c0_6, %c0_7] : memref<128x128xf32, #tpu.memory_space<vmem>>, vector<128x128xf32>
    %c0_8 = arith.constant 0 : index
    %c0_9 = arith.constant 0 : index
    %9 = vector.load %arg5[%c0_8, %c0_9] : memref<1x128xf32, #tpu.memory_space<vmem>>, vector<1x128xf32>
    %cst_10 = arith.constant dense<0.000000e+00> : vector<8x128xf32>
    %10 = tpu.matmul %7, %8, %cst_10 {dimension_numbers = #tpu.dot_dimension_numbers<[1], [0], [0], [1], [0, 0, 1, 1], [], []>} : vector<8x128xf32>, vector<128x128xf32>, vector<8x128xf32> -> vector<8x128xf32>
    %11 = vector.broadcast %9 : vector<1x128xf32> to vector<8x128xf32>
    %12 = arith.addf %10, %11 : vector<8x128xf32>
    %cst_11 = arith.constant 0.000000e+00 : f32
    %13 = vector.broadcast %cst_11 : f32 to vector<8x128xf32>
    %14 = arith.maximumf %12, %13 : vector<8x128xf32>
    %c0_12 = arith.constant 0 : index
    %c0_13 = arith.constant 0 : index
    %15 = vector.load %arg6[%c0_12, %c0_13] : memref<128x128xf32, #tpu.memory_space<vmem>>, vector<128x128xf32>
    %c0_14 = arith.constant 0 : index
    %c0_15 = arith.constant 0 : index
    %16 = vector.load %arg7[%c0_14, %c0_15] : memref<1x128xf32, #tpu.memory_space<vmem>>, vector<1x128xf32>
    %cst_16 = arith.constant dense<0.000000e+00> : vector<8x128xf32>
    %17 = tpu.matmul %14, %15, %cst_16 {dimension_numbers = #tpu.dot_dimension_numbers<[1], [0], [0], [1], [0, 0, 1, 1], [], []>} : vector<8x128xf32>, vector<128x128xf32>, vector<8x128xf32> -> vector<8x128xf32>
    %18 = vector.broadcast %16 : vector<1x128xf32> to vector<8x128xf32>
    %19 = arith.addf %17, %18 : vector<8x128xf32>
    %cst_17 = arith.constant 0.000000e+00 : f32
    %20 = vector.broadcast %cst_17 : f32 to vector<8x128xf32>
    %21 = arith.maximumf %19, %20 : vector<8x128xf32>
    %c0_18 = arith.constant 0 : index
    %c0_19 = arith.constant 0 : index
    %22 = vector.load %arg8[%c0_18, %c0_19] : memref<128x128xf32, #tpu.memory_space<vmem>>, vector<128x128xf32>
    %c0_20 = arith.constant 0 : index
    %c0_21 = arith.constant 0 : index
    %23 = vector.load %arg9[%c0_20, %c0_21] : memref<1x128xf32, #tpu.memory_space<vmem>>, vector<1x128xf32>
    %cst_22 = arith.constant dense<0.000000e+00> : vector<8x128xf32>
    %24 = tpu.matmul %21, %22, %cst_22 {dimension_numbers = #tpu.dot_dimension_numbers<[1], [0], [0], [1], [0, 0, 1, 1], [], []>} : vector<8x128xf32>, vector<128x128xf32>, vector<8x128xf32> -> vector<8x128xf32>
    %25 = vector.broadcast %23 : vector<1x128xf32> to vector<8x128xf32>
    %26 = arith.addf %24, %25 : vector<8x128xf32>
    %cst_23 = arith.constant 0.000000e+00 : f32
    %27 = vector.broadcast %cst_23 : f32 to vector<8x128xf32>
    %28 = arith.maximumf %26, %27 : vector<8x128xf32>
    %c0_24 = arith.constant 0 : index
    %c0_25 = arith.constant 0 : index
    %29 = vector.load %arg10[%c0_24, %c0_25] : memref<128x128xf32, #tpu.memory_space<vmem>>, vector<128x128xf32>
    %c0_26 = arith.constant 0 : index
    %c0_27 = arith.constant 0 : index
    %30 = vector.load %arg11[%c0_26, %c0_27] : memref<1x128xf32, #tpu.memory_space<vmem>>, vector<1x128xf32>
    %cst_28 = arith.constant dense<0.000000e+00> : vector<8x128xf32>
    %31 = tpu.matmul %28, %29, %cst_28 {dimension_numbers = #tpu.dot_dimension_numbers<[1], [0], [0], [1], [0, 0, 1, 1], [], []>} : vector<8x128xf32>, vector<128x128xf32>, vector<8x128xf32> -> vector<8x128xf32>
    %32 = vector.broadcast %30 : vector<1x128xf32> to vector<8x128xf32>
    %33 = arith.addf %31, %32 : vector<8x128xf32>
    %cst_29 = arith.constant 0.000000e+00 : f32
    %34 = vector.broadcast %cst_29 : f32 to vector<8x128xf32>
    %35 = arith.maximumf %33, %34 : vector<8x128xf32>
    %c0_30 = arith.constant 0 : index
    %c0_31 = arith.constant 0 : index
    %36 = vector.load %arg12[%c0_30, %c0_31] : memref<128x128xf32, #tpu.memory_space<vmem>>, vector<128x128xf32>
    %c0_32 = arith.constant 0 : index
    %c0_33 = arith.constant 0 : index
    %37 = vector.load %arg13[%c0_32, %c0_33] : memref<1x128xf32, #tpu.memory_space<vmem>>, vector<1x128xf32>
    %cst_34 = arith.constant dense<0.000000e+00> : vector<8x128xf32>
    %38 = tpu.matmul %35, %36, %cst_34 {dimension_numbers = #tpu.dot_dimension_numbers<[1], [0], [0], [1], [0, 0, 1, 1], [], []>} : vector<8x128xf32>, vector<128x128xf32>, vector<8x128xf32> -> vector<8x128xf32>
    %39 = vector.broadcast %37 : vector<1x128xf32> to vector<8x128xf32>
    %40 = arith.addf %38, %39 : vector<8x128xf32>
    %c0_35 = arith.constant 0 : index
    %c0_36 = arith.constant 0 : index
    %41 = vector.load %arg14[%c0_35, %c0_36] : memref<8x128xf32, #tpu.memory_space<vmem>>, vector<8x128xf32>
    tpu.vector_store %arg14[%c0_35, %c0_36], %40 {strides = array<i32>} : memref<8x128xf32, #tpu.memory_space<vmem>>, vector<8x128xf32>,
    return
  }
  func.func @transform_0(%arg0: i32) -> (i32, i32) {
    %c0_i32 = arith.constant 0 : i32
    %c0_i32_0 = arith.constant 0 : i32
    return %arg0, %c0_i32 : i32, i32
  }
  func.func @transform_1(%arg0: i32) -> (i32, i32) {
    %c0_i32 = arith.constant 0 : i32
    %c0_i32_0 = arith.constant 0 : i32
    %c0_i32_1 = arith.constant 0 : i32
    return %c0_i32, %c0_i32_0 : i32, i32
  }
  func.func @transform_2(%arg0: i32) -> (i32, i32) {
    %c0_i32 = arith.constant 0 : i32
    %c0_i32_0 = arith.constant 0 : i32
    %c0_i32_1 = arith.constant 0 : i32
    return %c0_i32, %c0_i32_0 : i32, i32
  }
  func.func @transform_3(%arg0: i32) -> (i32, i32) {
    %c0_i32 = arith.constant 0 : i32
    %c0_i32_0 = arith.constant 0 : i32
    %c0_i32_1 = arith.constant 0 : i32
    return %c0_i32, %c0_i32_0 : i32, i32
  }
  func.func @transform_4(%arg0: i32) -> (i32, i32) {
    %c0_i32 = arith.constant 0 : i32
    %c0_i32_0 = arith.constant 0 : i32
    %c0_i32_1 = arith.constant 0 : i32
    return %c0_i32, %c0_i32_0 : i32, i32
  }
  func.func @transform_5(%arg0: i32) -> (i32, i32) {
    %c0_i32 = arith.constant 0 : i32
    %c0_i32_0 = arith.constant 0 : i32
    %c0_i32_1 = arith.constant 0 : i32
    return %c0_i32, %c0_i32_0 : i32, i32
  }
  func.func @transform_6(%arg0: i32) -> (i32, i32) {
    %c0_i32 = arith.constant 0 : i32
    %c0_i32_0 = arith.constant 0 : i32
    %c0_i32_1 = arith.constant 0 : i32
    return %c0_i32, %c0_i32_0 : i32, i32
  }
  func.func @transform_7(%arg0: i32) -> (i32, i32) {
    %c0_i32 = arith.constant 0 : i32
    %c0_i32_0 = arith.constant 0 : i32
    %c0_i32_1 = arith.constant 0 : i32
    return %c0_i32, %c0_i32_0 : i32, i32
  }
  func.func @transform_8(%arg0: i32) -> (i32, i32) {
    %c0_i32 = arith.constant 0 : i32
    %c0_i32_0 = arith.constant 0 : i32
    %c0_i32_1 = arith.constant 0 : i32
    return %c0_i32, %c0_i32_0 : i32, i32
  }
  func.func @transform_9(%arg0: i32) -> (i32, i32) {
    %c0_i32 = arith.constant 0 : i32
    %c0_i32_0 = arith.constant 0 : i32
    %c0_i32_1 = arith.constant 0 : i32
    return %c0_i32, %c0_i32_0 : i32, i32
  }
  func.func @transform_10(%arg0: i32) -> (i32, i32) {
    %c0_i32 = arith.constant 0 : i32
    %c0_i32_0 = arith.constant 0 : i32
    %c0_i32_1 = arith.constant 0 : i32
    return %c0_i32, %c0_i32_0 : i32, i32
  }
  func.func @transform_11(%arg0: i32) -> (i32, i32) {
    %c0_i32 = arith.constant 0 : i32
    %c0_i32_0 = arith.constant 0 : i32
    %c0_i32_1 = arith.constant 0 : i32
    return %c0_i32, %c0_i32_0 : i32, i32
  }
  func.func @transform_12(%arg0: i32) -> (i32, i32) {
    %c0_i32 = arith.constant 0 : i32
    %c0_i32_0 = arith.constant 0 : i32
    %c0_i32_1 = arith.constant 0 : i32
    return %c0_i32, %c0_i32_0 : i32, i32
  }
  func.func @transform_13(%arg0: i32) -> (i32, i32) {
    %c0_i32 = arith.constant 0 : i32
    %c0_i32_0 = arith.constant 0 : i32
    return %arg0, %c0_i32 : i32, i32
  }
}

</mosaic_0001>

<bundles_post_ra>
// kernel: tpu_custom_call.1
= control target key start
LH: loop header
LB: loop body
LE: loop exit
PB: predicated region body
PF: predicated region fallthrough
CT: control target
= control target key end

     0   :  { %18 = vsyncpa [#allocation3], 0  ;;  %s1493_s0 = inlined_call_operand.vmem [shape: f32[8,3], index: 0, kind: input, shape index: {}]   ;;  %s1494_s1 = inlined_call_operand.vmem [shape: f32[3,128], index: 1, kind: input, shape index: {}]   ;;  %s1495_s2 = inlined_call_operand.vmem [shape: f32[1,128], index: 2, kind: input, shape index: {}]   ;;  %s1496_s3 = inlined_call_operand.hbm [shape: f32[128,128], index: 3, kind: input, shape index: {}]   ;;  %s1497_s4 = inlined_call_operand.vmem [shape: f32[1,128], index: 4, kind: input, shape index: {}]   ;;  %s1498_s5 = inlined_call_operand.hbm [shape: f32[128,128], index: 5, kind: input, shape index: {}]   ;;  %s1499_s6 = inlined_call_operand.vmem [shape: f32[1,128], index: 6, kind: input, shape index: {}]   ;;  %s1500_s7 = inlined_call_operand.hbm [shape: f32[128,128], index: 7, kind: input, shape index: {}]   ;;  %s1501_s8 = inlined_call_operand.vmem [shape: f32[1,128], index: 8, kind: input, shape index: {}]   ;;  %s1502_s9 = inlined_call_operand.hbm [shape: f32[128,128], index: 9, kind: input, shape index: {}]   ;;  %s1503_s10 = inlined_call_operand.vmem [shape: f32[1,128], index: 10, kind: input, shape index: {}]   ;;  %s1504_s11 = inlined_call_operand.hbm [shape: f32[128,128], index: 11, kind: input, shape index: {}]   ;;  %s1505_s12 = inlined_call_operand.vmem [shape: f32[1,128], index: 12, kind: input, shape index: {}]   ;;  %s1506_s13 = inlined_call_operand.hbm [shape: f32[8,128], index: 13, kind: output, shape index: {}]  }
   0x1   :  { %19 = vsyncpa [#allocation6], 0 }
   0x2   :  { %20 = vsyncpa [#allocation9], 0 }
   0x3   :  { %21 = vsyncpa [#allocation4], 0  ;;  %s1234_s25 = smov [#allocation5]   ;;  %s1235_s27 = smov [#allocation8]  }
   0x4   :  { %s47_s26 = sshll.u32 %s1234_s25, 4  ;;  %s75_s28 = sshll.u32 %s1235_s27, 4  ;;  %s48_s26 = int_to_ptr.vmem [resolvable:$true] %s47_s26  ;;  %s1315_s28 = int_to_ptr.vmem [resolvable:$true] %s75_s28 }
   0x5   :  { %s1094_s14 = scalar_lea.hbm %s1498_s5, 2048 }
   0x6   :  { %p1095_p0 = scmp.ne.s32.totalorder %s1498_s5, %s1094_s14  ;;  %p1098_p1 = scmp.lt.u32.totalorder %s1094_s14, %s1498_s5 }
   0x8   :  { %p1100_p2 = pnand %p1098_p1, %p1095_p0 }
   0xa   :  { %1103 = shalt.err (!%p1100_p2)
}
   0xb   :  { %s1104_s19 = scalar_lea.vmem %s48_s26, 2048  ;;  %p1109_p4 = scmp.lt.s32.totalorder %s48_s26, %s48_s26 }
   0xc   :  { %p1105_p3 = scmp.ne.s32.totalorder %s48_s26, %s1104_s19  ;;  %p1110_p5 = scmp.lt.s32.totalorder %s1104_s19, %s1104_s19 }
   0xe   :  { %p1111_p6 = por %p1110_p5, %p1109_p4 }
  0x10   :  { %p1112_p7 = pnand %p1111_p6, %p1105_p3 }
  0x12   :  { %1115 = shalt.err (!%p1112_p7)
}
  0x13   :  { %s1236_s20 = smov 128   ;;  %s1237_s21 = smov 8  }
  0x14   :  { %53 = dma.hbm_to_vmem [thread:$0]  %s1498_s5, 2048, %s48_s26, [#allocation6], %s1236_s20, %s1236_s20, %s1237_s21  }
  0x15   :  { %s1116_s27 = scalar_lea.hbm %s1502_s9, 2048 }
  0x16   :  { %p1117_p8 = scmp.ne.s32.totalorder %s1502_s9, %s1116_s27  ;;  %p1120_p9 = scmp.lt.u32.totalorder %s1116_s27, %s1502_s9 }
  0x18   :  { %p1122_p10 = pnand %p1120_p9, %p1117_p8 }
  0x1a   :  { %1125 = shalt.err (!%p1122_p10)
}
  0x1b   :  { %s1126_s16 = scalar_lea.vmem %s1315_s28, 2048  ;;  %p1131_p12 = scmp.lt.s32.totalorder %s1315_s28, %s1315_s28 }
  0x1c   :  { %p1127_p11 = scmp.ne.s32.totalorder %s1315_s28, %s1126_s16  ;;  %p1132_p13 = scmp.lt.s32.totalorder %s1126_s16, %s1126_s16 }
  0x1e   :  { %p1133_p0 = por %p1132_p13, %p1131_p12 }
  0x20   :  { %p1134_p1 = pnand %p1133_p0, %p1127_p11 }
  0x22   :  { %1137 = shalt.err (!%p1134_p1)
}
  0x23   :  { %81 = dma.hbm_to_vmem [thread:$0]  %s1502_s9, 2048, %s1315_s28, [#allocation9], %s1236_s20, %s1236_s20, %s1237_s21  }
  0x24   :  { %s1238_s17 = smov [#allocation2]   ;;  %s1239_s19 = smov [#allocation7]  }
  0x25   :  { %s33_s18 = sshll.u32 %s1238_s17, 4  ;;  %s61_s22 = sshll.u32 %s1239_s19, 4  ;;  %s34_s18 = int_to_ptr.vmem [resolvable:$true] %s33_s18  ;;  %s1352_s22 = int_to_ptr.vmem [resolvable:$true] %s61_s22 }
  0x26   :  { %s1138_s25 = scalar_lea.hbm %s1496_s3, 2048 }
  0x27   :  { %p1139_p2 = scmp.ne.s32.totalorder %s1496_s3, %s1138_s25  ;;  %p1142_p3 = scmp.lt.u32.totalorder %s1138_s25, %s1496_s3 }
  0x29   :  { %p1144_p4 = pnand %p1142_p3, %p1139_p2 }
  0x2b   :  { %1147 = shalt.err (!%p1144_p4)
}
  0x2c   :  { %s1148_s9 = scalar_lea.vmem %s34_s18, 2048  ;;  %p1153_p6 = scmp.lt.s32.totalorder %s34_s18, %s34_s18 }
  0x2d   :  { %p1149_p5 = scmp.ne.s32.totalorder %s34_s18, %s1148_s9  ;;  %p1154_p7 = scmp.lt.s32.totalorder %s1148_s9, %s1148_s9 }
  0x2f   :  { %p1155_p8 = por %p1154_p7, %p1153_p6 }
  0x31   :  { %p1156_p9 = pnand %p1155_p8, %p1149_p5 }
  0x33   :  { %1159 = shalt.err (!%p1156_p9)
}
  0x34   :  { %39 = dma.hbm_to_vmem [thread:$0]  %s1496_s3, 2048, %s34_s18, [#allocation3], %s1236_s20, %s1236_s20, %s1237_s21  }
  0x35   :  { %s1160_s26 = scalar_lea.hbm %s1500_s7, 2048 }
  0x36   :  { %p1161_p10 = scmp.ne.s32.totalorder %s1500_s7, %s1160_s26  ;;  %p1164_p11 = scmp.lt.u32.totalorder %s1160_s26, %s1500_s7 }
  0x38   :  { %p1166_p12 = pnand %p1164_p11, %p1161_p10 }
  0x3a   :  { %1169 = shalt.err (!%p1166_p12)
}
  0x3b   :  { %s1170_s25 = scalar_lea.vmem %s1352_s22, 2048  ;;  %p1175_p0 = scmp.lt.s32.totalorder %s1352_s22, %s1352_s22 }
  0x3c   :  { %p1171_p13 = scmp.ne.s32.totalorder %s1352_s22, %s1170_s25  ;;  %p1176_p1 = scmp.lt.s32.totalorder %s1170_s25, %s1170_s25 }
  0x3e   :  { %p1177_p2 = por %p1176_p1, %p1175_p0 }
  0x40   :  { %p1178_p3 = pnand %p1177_p2, %p1171_p13 }
  0x42   :  { %1181 = shalt.err (!%p1178_p3)
}
  0x43   :  { %67 = dma.hbm_to_vmem [thread:$0]  %s1500_s7, 2048, %s1352_s22, [#allocation6], %s1236_s20, %s1236_s20, %s1237_s21  }
  0x44   :  { %s1240_s27 = smov [#allocation10]   ;;  %s1182_s9 = scalar_lea.hbm %s1504_s11, 2048 }
  0x45   :  { %s89_s29 = sshll.u32 %s1240_s27, 4  ;;  %p1183_p4 = scmp.ne.s32.totalorder %s1504_s11, %s1182_s9  ;;  %s90_s29 = int_to_ptr.vmem [resolvable:$true] %s89_s29 }
  0x46   :  { %p1186_p5 = scmp.lt.u32.totalorder %s1182_s9, %s1504_s11 }
  0x48   :  { %p1188_p6 = pnand %p1186_p5, %p1183_p4 }
  0x4a   :  { %1191 = shalt.err (!%p1188_p6)
}
  0x4b   :  { %s1192_s26 = scalar_lea.vmem %s90_s29, 2048  ;;  %p1197_p8 = scmp.lt.s32.totalorder %s90_s29, %s90_s29 }
  0x4c   :  { %p1193_p7 = scmp.ne.s32.totalorder %s90_s29, %s1192_s26  ;;  %p1198_p9 = scmp.lt.s32.totalorder %s1192_s26, %s1192_s26 }
  0x4e   :  { %p1199_p10 = por %p1198_p9, %p1197_p8 }
  0x50   :  { %p1200_p11 = pnand %p1199_p10, %p1193_p7 }
  0x52   :  { %1203 = shalt.err (!%p1200_p11)
}
  0x53   :  { %95 = dma.hbm_to_vmem [thread:$0]  %s1504_s11, 2048, %s90_s29, [#allocation9], %s1236_s20, %s1236_s20, %s1237_s21  }
  0x54   :  { %1226 = dma.done.wait [#allocation3], 2048  }
  0x55   :  { %1227 = vsyncadd [#allocation3], 4294965248 }
  0x56   :  { %1228 = dma.done.wait [#allocation6], 4096  }
  0x57   :  { %1229 = vsyncadd [#allocation6], 4294963200 }
  0x58   :  { %1230 = dma.done.wait [#allocation9], 4096  }
  0x59   :  { %1231 = vsyncadd [#allocation9], 4294963200  ;;  %v1241_v0 = vmov 0.0   ;;  %vm1242_vm0 = vmmov 0   ;;  %v1243_v1 = vmov 0.0|0.0   ;;  %vm126_vm1 = vcmask 1042432  }
  0x5a   :  { %783 = vmatprep.subr.mxu0 %v1241_v0  ;;  %785 = vmatprep.mubr.msk.f32.mxu0 %vm1242_vm0, %v1241_v0  ;;  %vm122_vm2 = vcmask 23552   ;;  %v114_v2 = vld [vmem:[%s1494_s1] sm:$0x7]  ;;  %v202_v5 = vld [vmem:[#allocation2 + $0x8] sm:$0xff]  ;;  %v203_v6 = vld [vmem:[#allocation2 + $0x10] sm:$0xff]  ;;  %s1244_s27 = smov [#allocation11]  }
  0x5b   :  { %963 = vmatprep.subr.bf16.mxu1 %v1243_v1  ;;  %820 = vmatprep.mubr.msk.f32.mxu1 %vm1242_vm0, %v1241_v0  ;;  %v113_v3 = vld [vmem:[%s1493_s0] sm:$0xff]  ;;  %v204_v7 = vld [vmem:[#allocation2 + $0x18] sm:$0xff]  ;;  %v206_v11 = vld [vmem:[#allocation2 + $0x28] sm:$0xff]  ;;  %s677_s29 = sshll.u32 %s1244_s27, 4  ;;  %s678_s29 = int_to_ptr.vmem [resolvable:$true] %s677_s29 }
  0x5c   :  { %v201_v4 = vld [vmem:[#allocation2] sm:$0xff]  ;;  %784 = vmatpush3.msk.msra.mxu0 %vm126_vm1, %v114_v2  ;;  %v967_v9 = vpack.c.bf16 %v204_v7, %v203_v6  ;;  %v207_v13 = vld [vmem:[#allocation2 + $0x30] sm:$0xff]  ;;  %v208_v14 = vld [vmem:[#allocation2 + $0x38] sm:$0xff]  ;;  %s1204_s30 = scalar_lea.vmem %s678_s29, 128  ;;  %p1209_p13 = scmp.lt.s32.totalorder %s678_s29, %s678_s29 }
  0x5d   :  { %786 = vmatmul.mubr.msk.f32.vlgmr.msra.gmra.mrb[0].mxu0 %vm122_vm2, %v113_v3  ;;  %v964_v8 = vpack.c.bf16 %v202_v5, %v201_v4  ;;  %987 = vmatprep.subr.bf16.mxu0 %v1243_v1  ;;  %v205_v10 = vld [vmem:[#allocation2 + $0x20] sm:$0xff]  ;;  %v973_v15 = vpack.c.bf16 %v208_v14, %v207_v13  ;;  %v210_v17 = vld [vmem:[#allocation2 + $0x48] sm:$0xff]  ;;  %v211_v19 = vld [vmem:[#allocation2 + $0x50] sm:$0xff]  ;;  %p1205_p12 = scmp.ne.s32.totalorder %s678_s29, %s1204_s30  ;;  %p1210_p0 = scmp.lt.s32.totalorder %s1204_s30, %s1204_s30 }
  0x5e   :  { %855 = vmatprep.mubr.msk.f32.mxu0 %vm1242_vm0, %v1241_v0  ;;  %v970_v12 = vpack.c.bf16 %v206_v11, %v205_v10  ;;  %v209_v16 = vld [vmem:[#allocation2 + $0x40] sm:$0xff]  ;;  %v212_v20 = vld [vmem:[#allocation2 + $0x58] sm:$0xff]  ;;  %v214_v23 = vld [vmem:[#allocation2 + $0x68] sm:$0xff] }
  0x5f   :  { %965 = vmatpush3.bf16.msra.mxu1 %v964_v8  ;;  %v976_v18 = vpack.c.bf16 %v210_v17, %v209_v16  ;;  %v979_v21 = vpack.c.bf16 %v212_v20, %v211_v19  ;;  %v213_v22 = vld [vmem:[#allocation2 + $0x60] sm:$0xff]  ;;  %v215_v25 = vld [vmem:[#allocation2 + $0x70] sm:$0xff]  ;;  %v216_v26 = vld [vmem:[#allocation2 + $0x78] sm:$0xff]  ;;  %p1211_p1 = por %p1210_p0, %p1209_p13 }
  0x60   :  { %966 = vmatprep.subr.bf16.mxu1 %v1243_v1  ;;  %v982_v24 = vpack.c.bf16 %v214_v23, %v213_v22  ;;  %v985_v27 = vpack.c.bf16 %v216_v26, %v215_v25  ;;  %v295_v28 = vld [vmem:[#allocation5] sm:$0xff]  ;;  %v296_v29 = vld [vmem:[#allocation5 + $0x8] sm:$0xff]  ;;  %v297_v30 = vld [vmem:[#allocation5 + $0x10] sm:$0xff] }
  0x61   :  { %v988_v31 = vpack.c.bf16 %v296_v29, %v295_v28  ;;  %v298_v32 = vld [vmem:[#allocation5 + $0x18] sm:$0xff]  ;;  %v299_v34 = vld [vmem:[#allocation5 + $0x20] sm:$0xff]  ;;  %v300_v35 = vld [vmem:[#allocation5 + $0x28] sm:$0xff]  ;;  %p1212_p2 = pnand %p1211_p1, %p1205_p12 }
  0x62   :  { %v991_v33 = vpack.c.bf16 %v298_v32, %v297_v30  ;;  %v994_v36 = vpack.c.bf16 %v300_v35, %v299_v34  ;;  %v301_v37 = vld [vmem:[#allocation5 + $0x30] sm:$0xff]  ;;  %v302_v38 = vld [vmem:[#allocation5 + $0x38] sm:$0xff]  ;;  %v303_v40 = vld [vmem:[#allocation5 + $0x40] sm:$0xff] }
  0x63   :  { %968 = vmatpush3.bf16.msra.mxu1 %v967_v9  ;;  %989 = vmatpush3.bf16.msra.mxu0 %v988_v31  ;;  %v997_v39 = vpack.c.bf16 %v302_v38, %v301_v37  ;;  %v304_v41 = vld [vmem:[#allocation5 + $0x48] sm:$0xff]  ;;  %v305_v43 = vld [vmem:[#allocation5 + $0x50] sm:$0xff]  ;;  %v306_v44 = vld [vmem:[#allocation5 + $0x58] sm:$0xff] }
  0x64   :  { %969 = vmatprep.subr.bf16.mxu1 %v1243_v1  ;;  %990 = vmatprep.subr.bf16.mxu0 %v1243_v1  ;;  %v1000_v42 = vpack.c.bf16 %v304_v41, %v303_v40  ;;  %v1003_v45 = vpack.c.bf16 %v306_v44, %v305_v43  ;;  %v307_v46 = vld [vmem:[#allocation5 + $0x60] sm:$0xff]  ;;  %v308_v47 = vld [vmem:[#allocation5 + $0x68] sm:$0xff]  ;;  %v309_v54 = vld [vmem:[#allocation5 + $0x70] sm:$0xff] }
  0x65   :  { %v1006_v48 = vpack.c.bf16 %v308_v47, %v307_v46  ;;  %v688_v49 = vld [vmem:[%s1495_s2] ss:$0 sm:$0xff]  ;;  %v310_v55 = vld [vmem:[#allocation5 + $0x78] sm:$0xff]  ;;  %v390_v58 = vld [vmem:[#allocation7 + $0x8] sm:$0xff] }
  0x66   :  { %v1009_v56 = vpack.c.bf16 %v310_v55, %v309_v54  ;;  %v389_v57 = vld [vmem:[#allocation7] sm:$0xff]  ;;  %v391_v59 = vld [vmem:[#allocation7 + $0x10] sm:$0xff]  ;;  %v392_v61 = vld [vmem:[#allocation7 + $0x18] sm:$0xff] }
  0x67   :  { %971 = vmatpush3.bf16.msra.mxu1 %v970_v12  ;;  %992 = vmatpush3.bf16.msra.mxu0 %v991_v33  ;;  %v1012_v60 = vpack.c.bf16 %v390_v58, %v389_v57  ;;  %v1015_v62 = vpack.c.bf16 %v392_v61, %v391_v59  ;;  %v393_v63 = vld [vmem:[#allocation7 + $0x20] sm:$0xff]  ;;  %v394_v2 = vld [vmem:[#allocation7 + $0x28] sm:$0xff]  ;;  %v395_v4 = vld [vmem:[#allocation7 + $0x30] sm:$0xff] }
  0x68   :  { %972 = vmatprep.subr.bf16.mxu1 %v1243_v1  ;;  %993 = vmatprep.subr.bf16.mxu0 %v1243_v1  ;;  %v1018_v3 = vpack.c.bf16 %v394_v2, %v393_v63  ;;  %v396_v5 = vld [vmem:[#allocation7 + $0x38] sm:$0xff]  ;;  %v397_v7 = vld [vmem:[#allocation7 + $0x40] sm:$0xff]  ;;  %v398_v8 = vld [vmem:[#allocation7 + $0x48] sm:$0xff] }
  0x69   :  { %v1021_v6 = vpack.c.bf16 %v396_v5, %v395_v4  ;;  %v1024_v9 = vpack.c.bf16 %v398_v8, %v397_v7  ;;  %v399_v10 = vld [vmem:[#allocation7 + $0x50] sm:$0xff]  ;;  %v400_v11 = vld [vmem:[#allocation7 + $0x58] sm:$0xff]  ;;  %v401_v13 = vld [vmem:[#allocation7 + $0x60] sm:$0xff] }
  0x6a   :  { %v1027_v12 = vpack.c.bf16 %v400_v11, %v399_v10  ;;  %v402_v14 = vld [vmem:[#allocation7 + $0x68] sm:$0xff]  ;;  %v691_v16 = vld [vmem:[%s1497_s4] ss:$0 sm:$0xff]  ;;  %v404_v22 = vld [vmem:[#allocation7 + $0x78] sm:$0xff] }
  0x6b   :  { %974 = vmatpush3.bf16.msra.mxu1 %v973_v15  ;;  %995 = vmatpush3.bf16.msra.mxu0 %v994_v36  ;;  %v1030_v15 = vpack.c.bf16 %v402_v14, %v401_v13  ;;  %v484_v25 = vld [vmem:[#allocation8 + $0x8] sm:$0xff]  ;;  %v485_v26 = vld [vmem:[#allocation8 + $0x10] sm:$0xff]  ;;  %v486_v28 = vld [vmem:[#allocation8 + $0x18] sm:$0xff] }
  0x6c   :  { %975 = vmatprep.subr.bf16.mxu1 %v1243_v1  ;;  %996 = vmatprep.subr.bf16.mxu0 %v1243_v1  ;;  %v1039_v29 = vpack.c.bf16 %v486_v28, %v485_v26  ;;  %v487_v30 = vld [vmem:[#allocation8 + $0x20] sm:$0xff]  ;;  %v488_v31 = vld [vmem:[#allocation8 + $0x28] sm:$0xff]  ;;  %v489_v33 = vld [vmem:[#allocation8 + $0x30] sm:$0xff] }
  0x6d   :  { %v1042_v32 = vpack.c.bf16 %v488_v31, %v487_v30  ;;  %v490_v34 = vld [vmem:[#allocation8 + $0x38] sm:$0xff]  ;;  %v491_v36 = vld [vmem:[#allocation8 + $0x40] sm:$0xff]  ;;  %v492_v37 = vld [vmem:[#allocation8 + $0x48] sm:$0xff] }
  0x6e   :  { %v1045_v35 = vpack.c.bf16 %v490_v34, %v489_v33  ;;  %v1048_v38 = vpack.c.bf16 %v492_v37, %v491_v36  ;;  %v494_v40 = vld [vmem:[#allocation8 + $0x58] sm:$0xff]  ;;  %v496_v43 = vld [vmem:[#allocation8 + $0x68] sm:$0xff]  ;;  %v579_v55 = vld [vmem:[#allocation10 + $0x10] sm:$0xff] }
  0x6f   :  { %977 = vmatpush3.bf16.msra.mxu1 %v976_v18  ;;  %998 = vmatpush3.bf16.msra.mxu0 %v997_v39  ;;  %v493_v39 = vld [vmem:[#allocation8 + $0x50] sm:$0xff]  ;;  %v578_v54 = vld [vmem:[#allocation10 + $0x8] sm:$0xff]  ;;  %v580_v57 = vld [vmem:[#allocation10 + $0x18] sm:$0xff] }
  0x70   :  { %978 = vmatprep.subr.bf16.mxu1 %v1243_v1  ;;  %999 = vmatprep.subr.bf16.mxu0 %v1243_v1  ;;  %v1051_v41 = vpack.c.bf16 %v494_v40, %v493_v39  ;;  %v1063_v58 = vpack.c.bf16 %v580_v57, %v579_v55  ;;  %v581_v59 = vld [vmem:[#allocation10 + $0x20] sm:$0xff]  ;;  %v587_v5 = vld [vmem:[#allocation10 + $0x50] sm:$0xff] }
  0x71   :  { %v585_v2 = vld [vmem:[#allocation10 + $0x40] sm:$0xff] }
  0x72   :  { %v589_v8 = vld [vmem:[#allocation10 + $0x60] sm:$0xff] }
  0x73   :  { %980 = vmatpush3.bf16.msra.mxu1 %v979_v21  ;;  %1001 = vmatpush3.bf16.msra.mxu0 %v1000_v42  ;;  %v403_v21 = vld [vmem:[#allocation7 + $0x70] sm:$0xff]  ;;  %v495_v42 = vld [vmem:[#allocation8 + $0x60] sm:$0xff] }
  0x74   :  { %981 = vmatprep.subr.bf16.mxu1 %v1243_v1  ;;  %1002 = vmatprep.subr.bf16.mxu0 %v1243_v1  ;;  %v1033_v23 = vpack.c.bf16 %v404_v22, %v403_v21  ;;  %v1054_v44 = vpack.c.bf16 %v496_v43, %v495_v42  ;;  %v693_v11 = vld [vmem:[%s1501_s8] ss:$0 sm:$0xff] }
  0x77   :  { %983 = vmatpush3.bf16.msra.mxu1 %v982_v24  ;;  %1004 = vmatpush3.bf16.msra.mxu0 %v1003_v45  ;;  %v483_v24 = vld [vmem:[#allocation8] sm:$0xff] }
  0x78   :  { %984 = vmatprep.subr.bf16.mxu1 %v1243_v1  ;;  %1005 = vmatprep.subr.bf16.mxu0 %v1243_v1  ;;  %v692_v45 = vld [vmem:[%s1499_s6] ss:$0 sm:$0xff] }
  0x7b   :  { %986 = vmatpush3.bf16.msra.mxu1 %v985_v27  ;;  %1007 = vmatpush3.bf16.msra.mxu0 %v1006_v48  ;;  %v1036_v27 = vpack.c.bf16 %v484_v25, %v483_v24 }
  0x7c   :  { %1011 = vmatprep.subr.bf16.mxu1 %v1243_v1  ;;  %1008 = vmatprep.subr.bf16.mxu0 %v1243_v1 }
  0x7f   :  { %1010 = vmatpush3.bf16.msra.mxu0 %v1009_v56 }
  0x80   :  { %1035 = vmatprep.subr.bf16.mxu0 %v1243_v1 }
 0x130   :  { %v196_v50 = vpop.f32.mrb[0].mxu0 }
 0x131   :  { %v197_v51 = vadd.f32 %v688_v49, %v196_v50  ;;  %v787_v52 = vpop.f32.mrb[1].mxu0  ;;  %v497_v50 = vld [vmem:[#allocation8 + $0x70] sm:$0xff] }
 0x133   :  { %v200_v53 = vmax.f32 %v197_v51, 0.0  ;;  %v498_v51 = vld [vmem:[#allocation8 + $0x78] sm:$0xff] }
 0x134   :  { %v1057_v52 = vpack.c.bf16 %v498_v51, %v497_v50 }
 0x135   :  { %821 = vmatmul.mubr.f32.vlgmr.msra.gmra.mrb[0].mxu1 %v200_v53  ;;  %v577_v53 = vld [vmem:[#allocation10] sm:$0xff] }
 0x136   :  { %890 = vmatprep.mubr.msk.f32.mxu1 %vm1242_vm0, %v1241_v0  ;;  %1013 = vmatpush3.bf16.msra.mxu1 %v1012_v60  ;;  %v1060_v56 = vpack.c.bf16 %v578_v54, %v577_v53  ;;  %v582_v60 = vld [vmem:[#allocation10 + $0x28] sm:$0xff] }
 0x137   :  { %1014 = vmatprep.subr.bf16.mxu1 %v1243_v1  ;;  %v1066_v61 = vpack.c.bf16 %v582_v60, %v581_v59 }
 0x13a   :  { %1016 = vmatpush3.bf16.msra.mxu1 %v1015_v62  ;;  %v584_v62 = vld [vmem:[#allocation10 + $0x38] sm:$0xff] }
 0x13b   :  { %1017 = vmatprep.subr.bf16.mxu1 %v1243_v1 }
 0x13e   :  { %1019 = vmatpush3.bf16.msra.mxu1 %v1018_v3  ;;  %v586_v3 = vld [vmem:[#allocation10 + $0x48] sm:$0xff] }
 0x13f   :  { %1020 = vmatprep.subr.bf16.mxu1 %v1243_v1  ;;  %v1072_v4 = vpack.c.bf16 %v586_v3, %v585_v2 }
 0x142   :  { %1022 = vmatpush3.bf16.msra.mxu1 %v1021_v6  ;;  %v588_v6 = vld [vmem:[#allocation10 + $0x58] sm:$0xff] }
 0x143   :  { %1023 = vmatprep.subr.bf16.mxu1 %v1243_v1  ;;  %v1075_v7 = vpack.c.bf16 %v588_v6, %v587_v5 }
 0x146   :  { %1025 = vmatpush3.bf16.msra.mxu1 %v1024_v9  ;;  %v590_v9 = vld [vmem:[#allocation10 + $0x68] sm:$0xff] }
 0x147   :  { %1026 = vmatprep.subr.bf16.mxu1 %v1243_v1  ;;  %v1078_v10 = vpack.c.bf16 %v590_v9, %v589_v8 }
 0x14a   :  { %1028 = vmatpush3.bf16.msra.mxu1 %v1027_v12 }
 0x14b   :  { %1029 = vmatprep.subr.bf16.mxu1 %v1243_v1 }
 0x14e   :  { %1031 = vmatpush3.bf16.msra.mxu1 %v1030_v15 }
 0x14f   :  { %1032 = vmatprep.subr.bf16.mxu1 %v1243_v1 }
 0x152   :  { %1034 = vmatpush3.bf16.msra.mxu1 %v1033_v23  ;;  %v695_v23 = vld [vmem:[%s1505_s12] ss:$0 sm:$0xff] }
 0x153   :  { %1059 = vmatprep.subr.bf16.mxu1 %v1243_v1 }
 0x208   :  { %v290_v17 = vpop.f32.mrb[0].mxu1 }
 0x209   :  { %v291_v18 = vadd.f32 %v691_v16, %v290_v17  ;;  %v822_v19 = vpop.f32.mrb[1].mxu1  ;;  %v591_v16 = vld [vmem:[#allocation10 + $0x70] sm:$0xff]  ;;  %v592_v17 = vld [vmem:[#allocation10 + $0x78] sm:$0xff] }
 0x20a   :  { %v694_v19 = vld [vmem:[%s1503_s10] ss:$0 sm:$0xff] }
 0x20b   :  { %v294_v20 = vmax.f32 %v291_v18, 0.0  ;;  %v1081_v18 = vpack.c.bf16 %v592_v17, %v591_v16 }
 0x20d   :  { %856 = vmatmul.mubr.f32.vlgmr.msra.gmra.mrb[2].mxu0 %v294_v20 }
 0x20e   :  { %925 = vmatprep.mubr.msk.f32.mxu0 %vm1242_vm0, %v1241_v0  ;;  %1037 = vmatpush3.bf16.msra.mxu0 %v1036_v27 }
 0x20f   :  { %1038 = vmatprep.subr.bf16.mxu0 %v1243_v1 }
 0x212   :  { %1040 = vmatpush3.bf16.msra.mxu0 %v1039_v29 }
 0x213   :  { %1041 = vmatprep.subr.bf16.mxu0 %v1243_v1 }
 0x216   :  { %1043 = vmatpush3.bf16.msra.mxu0 %v1042_v32 }
 0x217   :  { %1044 = vmatprep.subr.bf16.mxu0 %v1243_v1 }
 0x21a   :  { %1046 = vmatpush3.bf16.msra.mxu0 %v1045_v35 }
 0x21b   :  { %1047 = vmatprep.subr.bf16.mxu0 %v1243_v1 }
 0x21e   :  { %1049 = vmatpush3.bf16.msra.mxu0 %v1048_v38 }
 0x21f   :  { %1050 = vmatprep.subr.bf16.mxu0 %v1243_v1 }
 0x222   :  { %1052 = vmatpush3.bf16.msra.mxu0 %v1051_v41 }
 0x223   :  { %1053 = vmatprep.subr.bf16.mxu0 %v1243_v1 }
 0x226   :  { %1055 = vmatpush3.bf16.msra.mxu0 %v1054_v44 }
 0x227   :  { %1056 = vmatprep.subr.bf16.mxu0 %v1243_v1 }
 0x22a   :  { %1058 = vmatpush3.bf16.msra.mxu0 %v1057_v52 }
 0x2e0   :  { %v384_v46 = vpop.f32.mrb[2].mxu0 }
 0x2e1   :  { %v385_v47 = vadd.f32 %v692_v45, %v384_v46  ;;  %v857_v48 = vpop.f32.mrb[3].mxu0 }
 0x2e3   :  { %v388_v49 = vmax.f32 %v385_v47, 0.0 }
 0x2e5   :  { %891 = vmatmul.mubr.f32.vlgmr.msra.gmra.mrb[2].mxu1 %v388_v49 }
 0x2e6   :  { %960 = vmatprep.mubr.msk.f32.mxu1 %vm1242_vm0, %v1241_v0  ;;  %1061 = vmatpush3.bf16.msra.mxu1 %v1060_v56  ;;  %v583_v0 = vld [vmem:[#allocation10 + $0x30] sm:$0xff] }
 0x2e7   :  { %1062 = vmatprep.subr.bf16.mxu1 %v1243_v1  ;;  %v1069_v63 = vpack.c.bf16 %v584_v62, %v583_v0 }
 0x2ea   :  { %1064 = vmatpush3.bf16.msra.mxu1 %v1063_v58 }
 0x2eb   :  { %1065 = vmatprep.subr.bf16.mxu1 %v1243_v1 }
 0x2ee   :  { %1067 = vmatpush3.bf16.msra.mxu1 %v1066_v61 }
 0x2ef   :  { %1068 = vmatprep.subr.bf16.mxu1 %v1243_v1 }
 0x2f2   :  { %1070 = vmatpush3.bf16.msra.mxu1 %v1069_v63 }
 0x2f3   :  { %1071 = vmatprep.subr.bf16.mxu1 %v1243_v1 }
 0x2f6   :  { %1073 = vmatpush3.bf16.msra.mxu1 %v1072_v4 }
 0x2f7   :  { %1074 = vmatprep.subr.bf16.mxu1 %v1243_v1 }
 0x2fa   :  { %1076 = vmatpush3.bf16.msra.mxu1 %v1075_v7 }
 0x2fb   :  { %1077 = vmatprep.subr.bf16.mxu1 %v1243_v1 }
 0x2fe   :  { %1079 = vmatpush3.bf16.msra.mxu1 %v1078_v10 }
 0x2ff   :  { %1080 = vmatprep.subr.bf16.mxu1 %v1243_v1 }
 0x302   :  { %1082 = vmatpush3.bf16.msra.mxu1 %v1081_v18 }
 0x3b8   :  { %v478_v12 = vpop.f32.mrb[2].mxu1 }
 0x3b9   :  { %v479_v13 = vadd.f32 %v693_v11, %v478_v12  ;;  %v892_v14 = vpop.f32.mrb[3].mxu1 }
 0x3bb   :  { %v482_v15 = vmax.f32 %v479_v13, 0.0 }
 0x3bd   :  { %926 = vmatmul.mubr.f32.vlgmr.msra.gmra.mrb[4].mxu0 %v482_v15 }
 0x490   :  { %v572_v20 = vpop.f32.mrb[4].mxu0 }
 0x491   :  { %v573_v21 = vadd.f32 %v694_v19, %v572_v20  ;;  %v927_v1 = vpop.f32.mrb[5].mxu0 }
 0x493   :  { %v576_v22 = vmax.f32 %v573_v21, 0.0 }
 0x495   :  { %961 = vmatmul.mubr.f32.vlgmr.msra.gmra.mrb[4].mxu1 %v576_v22 }
 0x568   :  { %v666_v24 = vpop.f32.mrb[4].mxu1 }
 0x569   :  { %v667_v25 = vadd.f32 %v695_v23, %v666_v24  ;;  %v962_v26 = vpop.f32.mrb[5].mxu1 }
 0x56b   :  { %670 = vst [vmem:[#allocation11] sm:$0xff] %v667_v25 }
 0x56c   :  { %1215 = shalt.err (!%p1212_p2)
}
 0x56d   :  { %s1216_s9 = scalar_lea.hbm %s1506_s13, 128 }
 0x56e   :  { %p1217_p3 = scmp.ne.s32.totalorder %s1506_s13, %s1216_s9  ;;  %p1220_p4 = scmp.lt.u32.totalorder %s1216_s9, %s1506_s13 }
 0x570   :  { %p1222_p5 = pnand %p1220_p4, %p1217_p3 }
 0x572   :  { %1225 = shalt.err (!%p1222_p5)
}
 0x573   :  { %680 = dma.vmem_to_hbm [thread:$0]  %s678_s29, 128, %s1506_s13, [#allocation4]  }
 0x574   :  { %1232 = dma.done.wait [#allocation4], 128  }
 0x575   :  { %1233 = vsyncadd [#allocation4], 4294967168 }
 0x576   :  { %684 = vsyncpa [#allocation3], 1 }
 0x577   :  { %685 = vsyncpa [#allocation6], 1 }
 0x578   :  { %686 = vsyncpa [#allocation9], 1 }
 0x579   :  { %687 = vsyncpa [#allocation4], 1 }

</bundles_post_ra>
